<compile_context>
chip_gen: v5e
topology: v5e:2x2
jax: 0.10.0
libtpu: 0.0.40
codegen_flags: <defaults>
</compile_context>

<pallas_src>
import functools

import jax
import jax.numpy as jnp
from jax.experimental import pallas as pl
from jax.experimental.pallas import tpu as pltpu


# --------------------------------------------------------------------------- #
# Kernels
# --------------------------------------------------------------------------- #
def _gcn_kernel_fused(adj_ref, w_ref, x_ref, o_ref, *, channel_first):
    """Fully fused 2-D kernel for small graphs.

    adj_ref: (tb*N, tb*N)    = kron(I_tb, A)          (grid-invariant)
    w_ref  : (T*Cin, T*Cout) = kron(I_T, Theta.W^T)   (grid-invariant)
    x_ref  : (tb*N, T*Cin)   lane-dense input slab
    o_ref  : (tb*N, T*Cout)  lane-dense output slab
    """
    x = x_ref[...]
    adj = adj_ref[...]
    w = w_ref[...]
    if channel_first:          # contract channels first (Cout <= Cin)
        t = jnp.dot(x, w, preferred_element_type=jnp.float32).astype(x.dtype)
        y = jnp.dot(adj, t, preferred_element_type=jnp.float32)
    else:                      # contract vertices first (Cin < Cout)
        t = jnp.dot(adj, x, preferred_element_type=jnp.float32).astype(x.dtype)
        y = jnp.dot(t, w, preferred_element_type=jnp.float32)
    o_ref[...] = jnp.maximum(y, 0.0).astype(o_ref.dtype)


def _gcn_kernel_looped(adj_ref, w_ref, x_ref, o_ref, *, channel_first, blockdiag_w):
    """Per-sample loop for larger graphs.

    adj_ref: (N, N); w_ref: (T*Cin, T*Cout) block-diagonal (or (Cin, Cout) fallback)
    x_ref: (tb, N, T*Cin); o_ref: (tb, N, T*Cout)
    """
    TB, N, TCin = x_ref.shape
    TCout = o_ref.shape[-1]
    adj = adj_ref[...]
    w = w_ref[...]
    for b in range(TB):        # TB is small and static -> unrolled
        xb = x_ref[b]
        if blockdiag_w:
            if channel_first:
                t = jnp.dot(xb, w, preferred_element_type=jnp.float32).astype(xb.dtype)
                y = jnp.dot(adj, t, preferred_element_type=jnp.float32)
            else:
                t = jnp.dot(adj, xb, preferred_element_type=jnp.float32).astype(xb.dtype)
                y = jnp.dot(t, w, preferred_element_type=jnp.float32)
        else:
            # Fallback for extreme T*C where kron(I_T, W) would not fit in VMEM:
            # plain (Cin, Cout) weight; pays one cross-lane relayout per sample.
            Cin, Cout = w.shape
            T = TCin // Cin
            if channel_first:
                t = jnp.dot(xb.reshape(N * T, Cin), w,
                            preferred_element_type=jnp.float32)
                t = t.reshape(N, T * Cout).astype(xb.dtype)
                y = jnp.dot(adj, t, preferred_element_type=jnp.float32)
            else:
                t = jnp.dot(adj, xb, preferred_element_type=jnp.float32).astype(xb.dtype)
                y = jnp.dot(t.reshape(N * T, Cin), w,
                            preferred_element_type=jnp.float32).reshape(N, T * Cout)
        o_ref[b] = jnp.maximum(y, 0.0).astype(o_ref.dtype)


# --------------------------------------------------------------------------- #
# Wrapper
# --------------------------------------------------------------------------- #
def _tpu_vmem_capacity_bytes():
    """Physical per-TensorCore VMEM; conservative (v7x-sized) fallback."""
    try:
        cap = int(getattr(pltpu.get_tpu_info(), "vmem_capacity_bytes", 0))
        if cap > 0:
            return cap
    except Exception:
        pass
    return 64 << 20


def gcn_forward(x, adj, theta_w, *, compute_dtype=jnp.bfloat16):
    """x: (B, N, T, Cin); adj: (N, N); theta_w: (Cout, Cin) (torch Linear layout)."""
    B, N, T, Cin = x.shape
    Cout = theta_w.shape[0]
    out_dtype = x.dtype
    TCin, TCout = T * Cin, T * Cout
    c_size = jnp.dtype(compute_dtype).itemsize
    o_size = jnp.dtype(out_dtype).itemsize
    channel_first = Cout <= Cin            # FLOP-optimal contraction order

    # ---- operand prep: contiguous reshapes + tiny weight transforms only ----
    x3 = x.reshape(B, N, TCin).astype(compute_dtype)           # lane-dense slab
    wt = theta_w.T.astype(compute_dtype)                       # (Cin, Cout)
    adj_c = adj.astype(compute_dtype)

    # Block-diagonal weight kron(I_T, W^T): the channel matmul runs directly on
    # the (.., T*Cin) lane layout with zero in-kernel relayouts and K = T*Cin.
    blockdiag_w = (TCin * TCout * c_size <= (8 << 20)
                   and TCin <= 2048 and TCout <= 2048)
    if blockdiag_w:
        w_arg = jnp.kron(jnp.eye(T, dtype=compute_dtype), wt)  # (T*Cin, T*Cout)
    else:
        w_arg = wt  # TODO(synk): tile T on a grid axis instead of this relayout path.

    # ---- generation-aware VMEM budget ----
    vmem_cap = _tpu_vmem_capacity_bytes()
    if vmem_cap <= (64 << 20):             # v7x-class: 64 MiB/TC, two TensorCores
        vmem_limit = min(48 << 20, (vmem_cap * 3) // 4)
        want_multicore = True
    else:                                  # v5e / v6e: 128 MiB, single TensorCore
        vmem_limit = min(96 << 20, (vmem_cap * 3) // 4)
        want_multicore = False
    budget = (vmem_limit * 2) // 3         # headroom for Mosaic internal scratch

    # Consistent accounting: double-buffered in/out blocks AND the grid-invariant
    # adj / weight blocks (2x each), plus f32 matmul intermediates + bf16 recast.
    resident = 2 * (N * N + w_arg.size) * c_size

    def _per_tb_bytes(tb):
        blk_in = tb * N * TCin * c_size
        blk_out = tb * N * TCout * o_size
        inter = tb * N * (max(TCin, TCout) * (4 + c_size) + TCout * 4)
        return 2 * (blk_in + blk_out) + inter

    tb = 1
    for cand in range(2, B + 1):
        if resident + _per_tb_bytes(cand) <= budget:
            tb = cand
        else:
            break

    # Grid sizing: single-TC parts (v5e/v6e) take the biggest block possible;
    # on v7x keep an even number of >=2 grid steps so both TensorCores get work.
    grid_n = pl.cdiv(B, tb)
    if want_multicore and B >= 2:
        grid_n = max(2, grid_n)
        grid_n += grid_n % 2
        tb = pl.cdiv(B, grid_n)            # shrink blocks rather than over-pad
        grid_n = pl.cdiv(B, tb)
        grid_n += grid_n % 2
    B_pad = grid_n * tb
    if B_pad != B:                         # pad instead of collapsing to tb == 1
        x3 = jnp.pad(x3, ((0, B_pad - B), (0, 0), (0, 0)))

    # Small graphs: fold the batch tile into the vertex dim with kron(I_tb, A) so
    # the adjacency contraction is one wide MXU call (tb*N <= 256 keeps it within
    # a single MXU pass -> zero extra work, no per-sample drains, no transposes).
    fuse_batch = (blockdiag_w and (tb * N) <= 256
                  and ((tb * N) % 8 == 0 or grid_n == 1))

    flops = int(2 * B * T * (N * N * min(Cin, Cout) + N * Cin * Cout))
    compiler_params = pltpu.CompilerParams(
        dimension_semantics=("parallel",),
        vmem_limit_bytes=int(vmem_limit),
    )

    if fuse_batch:
        adj_arg = jnp.kron(jnp.eye(tb, dtype=compute_dtype), adj_c)  # (tb*N, tb*N)
        x_in = x3.reshape(B_pad * N, TCin)                           # free reshape
        cost = pl.CostEstimate(
            flops=flops, transcendentals=0,
            bytes_accessed=int(x_in.size * c_size + B_pad * N * TCout * o_size
                               + adj_arg.size * c_size + w_arg.size * c_size))
        out2 = pl.pallas_call(
            functools.partial(_gcn_kernel_fused, channel_first=channel_first),
            out_shape=jax.ShapeDtypeStruct((B_pad * N, TCout), out_dtype),
            grid_spec=pltpu.PrefetchScalarGridSpec(
                num_scalar_prefetch=0,
                grid=(grid_n,),
                in_specs=[
                    pl.BlockSpec((tb * N, tb * N), lambda i: (0, 0)),  # adj (invariant)
                    pl.BlockSpec(w_arg.shape, lambda i: (0, 0)),       # weight (invariant)
                    pl.BlockSpec((tb * N, TCin), lambda i: (i, 0)),    # streamed input
                ],
                out_specs=pl.BlockSpec((tb * N, TCout), lambda i: (i, 0)),
            ),
            compiler_params=compiler_params,
            cost_estimate=cost,
        )(adj_arg, w_arg, x_in)
        out3 = out2.reshape(B_pad, N, TCout)
    else:
        # TODO(synk): for very large N on v7x, additionally tile adjacency rows on a
        # second "parallel" grid axis so the resident (N, N) block stops eating VMEM.
        cost = pl.CostEstimate(
            flops=flops, transcendentals=0,
            bytes_accessed=int(x3.size * c_size + B_pad * N * TCout * o_size
                               + adj_c.size * c_size + w_arg.size * c_size))
        out3 = pl.pallas_call(
            functools.partial(_gcn_kernel_looped, channel_first=channel_first,
                              blockdiag_w=blockdiag_w),
            out_shape=jax.ShapeDtypeStruct((B_pad, N, TCout), out_dtype),
            grid_spec=pltpu.PrefetchScalarGridSpec(
                num_scalar_prefetch=0,
                grid=(grid_n,),
                in_specs=[
                    pl.BlockSpec((N, N), lambda i: (0, 0)),            # adj (invariant)
                    pl.BlockSpec(w_arg.shape, lambda i: (0, 0)),       # weight (invariant)
                    pl.BlockSpec((tb, N, TCin), lambda i: (i, 0, 0)),  # streamed input
                ],
                out_specs=pl.BlockSpec((tb, N, TCout), lambda i: (i, 0, 0)),
            ),
            compiler_params=compiler_params,
            cost_estimate=cost,
        )(adj_c, w_arg, x3)

    # Contiguous (free) reshape back to the PyTorch output layout (B, N, T, Cout).
    return out3[:B].reshape(B, N, T, Cout)


# --------------------------------------------------------------------------- #
# Reference & test
# --------------------------------------------------------------------------- #
def _reference(x, adj, theta_w):
    # Mirrors the PyTorch forward exactly (including its permutes/reshapes), in f32.
    B, N, T, Cin = x.shape
    Cout = theta_w.shape[0]
    x2 = jnp.transpose(x, (0, 2, 1, 3)).reshape(B * T, N, Cin)
    y = jnp.maximum(jnp.einsum("nm,bmc->bnc", adj, x2) @ theta_w.T, 0.0)
    return jnp.transpose(y.reshape(B, T, N, Cout), (0, 2, 1, 3))


if __name__ == "__main__":
    key = jax.random.PRNGKey(0)
    k_adj, k_x, k_w = jax.random.split(key, 3)

    B, N, T, Cin, Cout = 2, 16, 8, 32, 32

    # deterministic symmetric-normalized adjacency: D^-1/2 (A + I) D^-1/2
    a = (jax.random.uniform(k_adj, (N, N)) > 0.5).astype(jnp.float32)
    a = jnp.maximum(a, a.T) + jnp.eye(N, dtype=jnp.float32)
    d_inv_sqrt = 1.0 / jnp.sqrt(jnp.sum(a, axis=-1))
    adj = a * d_inv_sqrt[:, None] * d_inv_sqrt[None, :]

    x = jax.random.normal(k_x, (B, N, T, Cin), dtype=jnp.float32)
    # nn.Linear(in, out, bias=False) weight has shape (out, in)
    bound = 1.0 / (Cin ** 0.5)
    theta_w = jax.random.uniform(k_w, (Cout, Cin), minval=-bound, maxval=bound,
                                 dtype=jnp.float32)

    out = jax.block_until_ready(gcn_forward(x, adj, theta_w))
    ref = _reference(x, adj, theta_w)

    assert out.shape == (B, N, T, Cout)
    # bf16 operands + f32 accumulation vs. the all-f32 reference math.
    assert jnp.allclose(out, ref, atol=2e-2, rtol=2e-2), \
        float(jnp.max(jnp.abs(out - ref)))

    print("KERNEL_OK")
</pallas_src>

<mosaic_0001>
module attributes {stable_mosaic.version = 11 : i64} {
  func.func @_gcn_kernel_fused(%arg0: i32, %arg1: memref<16x16xbf16, #tpu.memory_space<vmem>>, %arg2: memref<256x256xbf16, #tpu.memory_space<vmem>>, %arg3: memref<16x256xbf16, #tpu.memory_space<vmem>>, %arg4: memref<16x256xf32, #tpu.memory_space<vmem>>) attributes {dimension_semantics = [#tpu.dimension_semantics<parallel>], iteration_bounds = array<i64: 2>, scalar_prefetch = 0 : i64, scratch_operands = 0 : i64, tpu.core_type = #tpu.core_type<tc>, window_params = [{pipeline_mode = #tpu.pipeline_mode<synchronous>, transform_indices = @transform_0, window_bounds = array<i64: 16, 16>}, {pipeline_mode = #tpu.pipeline_mode<synchronous>, transform_indices = @transform_1, window_bounds = array<i64: 256, 256>}, {transform_indices = @transform_2, window_bounds = array<i64: 16, 256>}, {transform_indices = @transform_3, window_bounds = array<i64: 16, 256>}]} {
    %c0 = arith.constant 0 : index
    %c0_0 = arith.constant 0 : index
    %0 = vector.load %arg3[%c0, %c0_0] : memref<16x256xbf16, #tpu.memory_space<vmem>>, vector<16x256xbf16>
    %c0_1 = arith.constant 0 : index
    %c0_2 = arith.constant 0 : index
    %1 = vector.load %arg1[%c0_1, %c0_2] : memref<16x16xbf16, #tpu.memory_space<vmem>>, vector<16x16xbf16>
    %c0_3 = arith.constant 0 : index
    %c0_4 = arith.constant 0 : index
    %2 = vector.load %arg2[%c0_3, %c0_4] : memref<256x256xbf16, #tpu.memory_space<vmem>>, vector<256x256xbf16>
    %cst = arith.constant dense<0.000000e+00> : vector<16x256xf32>
    %3 = tpu.matmul %0, %2, %cst {dimension_numbers = #tpu.dot_dimension_numbers<[1], [0], [0], [1], [0, 0, 1, 1], [], []>} : vector<16x256xbf16>, vector<256x256xbf16>, vector<16x256xf32> -> vector<16x256xf32>
    %4 = arith.truncf %3 : vector<16x256xf32> to vector<16x256xbf16>
    %cst_5 = arith.constant dense<0.000000e+00> : vector<16x256xf32>
    %5 = tpu.matmul %1, %4, %cst_5 {dimension_numbers = #tpu.dot_dimension_numbers<[1], [0], [0], [1], [0, 0, 1, 1], [], []>} : vector<16x16xbf16>, vector<16x256xbf16>, vector<16x256xf32> -> vector<16x256xf32>
    %cst_6 = arith.constant 0.000000e+00 : f32
    %6 = vector.broadcast %cst_6 : f32 to vector<16x256xf32>
    %7 = arith.maximumf %5, %6 : vector<16x256xf32>
    %c0_7 = arith.constant 0 : index
    %c0_8 = arith.constant 0 : index
    %8 = vector.load %arg4[%c0_7, %c0_8] : memref<16x256xf32, #tpu.memory_space<vmem>>, vector<16x256xf32>
    tpu.vector_store %arg4[%c0_7, %c0_8], %7 {strides = array<i32>} : memref<16x256xf32, #tpu.memory_space<vmem>>, vector<16x256xf32>,
    return
  }
  func.func @transform_0(%arg0: i32) -> (i32, i32) {
    %c0_i32 = arith.constant 0 : i32
    %c0_i32_0 = arith.constant 0 : i32
    %c0_i32_1 = arith.constant 0 : i32
    return %c0_i32, %c0_i32_0 : i32, i32
  }
  func.func @transform_1(%arg0: i32) -> (i32, i32) {
    %c0_i32 = arith.constant 0 : i32
    %c0_i32_0 = arith.constant 0 : i32
    %c0_i32_1 = arith.constant 0 : i32
    return %c0_i32, %c0_i32_0 : i32, i32
  }
  func.func @transform_2(%arg0: i32) -> (i32, i32) {
    %c0_i32 = arith.constant 0 : i32
    %c0_i32_0 = arith.constant 0 : i32
    return %arg0, %c0_i32 : i32, i32
  }
  func.func @transform_3(%arg0: i32) -> (i32, i32) {
    %c0_i32 = arith.constant 0 : i32
    %c0_i32_0 = arith.constant 0 : i32
    return %arg0, %c0_i32 : i32, i32
  }
}

</mosaic_0001>

<bundles_post_ra>
// kernel: tpu_custom_call.1
= control target key start
LH: loop header
LB: loop body
LE: loop exit
PB: predicated region body
PF: predicated region fallthrough
CT: control target
= control target key end

     0   :  { %8 = vsyncpa [#allocation3], 0  ;;  %s1271_s0 = inlined_call_operand.hbm [shape: bf16[16,16], index: 0, kind: input, shape index: {}]   ;;  %s1272_s1 = inlined_call_operand.hbm [shape: bf16[256,256], index: 1, kind: input, shape index: {}]   ;;  %s1273_s2 = inlined_call_operand.hbm [shape: bf16[32,256], index: 2, kind: input, shape index: {}]   ;;  %s1274_s3 = inlined_call_operand.hbm [shape: f32[32,256], index: 3, kind: output, shape index: {}]  }
   0x1   :  { %9 = vsyncpa [#allocation6], 0 }
   0x2   :  { %10 = vsyncpa [#allocation4], 0 }
   0x3   :  { %12 = vsyncpa [#allocation4 + $0x1], 0  ;;  %s1112_s12 = smov 0   ;;  %s1114_s13 = smov 0  }
   0x4   :  { %s1116_s14 = smov 0   ;;  %s1118_s15 = smov 0  }
   0x5 LB: > { %s1133_s16 = sadd.s32 4294967295, %s1082_s15   ;;  %s644_s17 = sadd.s32 4294967294, %s1082_s15   ;;  %s1082_s15 = sphi %s1118_s15, %s1284_s15   ;;  %s1078_s14 = sphi %s1116_s14, %s1283_s14   ;;  %s1074_s13 = sphi %s1114_s13, %s1282_s13   ;;  %s1070_s12 = sphi %s1112_s12, %s1281_s12  }
   0x6   : > { %p80_p0 = scmp.ne.s32.totalorder %s1074_s13, %s1070_s12  ;;  %p81_p1 = scmp.eq.s32.totalorder %s1133_s16, 0 }
   0x7   : > { %p104_p2 = scmp.eq.s32.totalorder %s1133_s16, 1  ;;  %p110_p3 = scmp.eq.s32.totalorder %s644_s17, 1 }
   0x8   : > { %p1142_p4 = por %p81_p1, %p80_p0  ;;  %p645_p5 = scmp.ge.s32.totalorder %s1082_s15, 1 }
   0x9   : > { %p1147_p6 = por %p110_p3, %p80_p0  ;;  %p117_p7 = scmp.lt.s32.totalorder %s1082_s15, 3 }
   0xa   : > { %s128_s22 = sshll.u32 %s1271_s0, 4  ;;  %s1084_s24 = smov [#allocation2]   ;;  %s129_s22 = int_to_ptr.hbm [resolvable:$true] %s128_s22 }
   0xb   : > { %p1155_p8 = pnand %p645_p5, %p117_p7  ;;  %s130_s25 = sshll.u32 %s1084_s24, 4  ;;  %s131_s25 = int_to_ptr.vmem [resolvable:$true] %s130_s25 }
   0xc   : > { %s142_s28 = sshll.u32 %s1272_s1, 4  ;;  %s1085_s29 = smov 64   ;;  %s143_s28 = int_to_ptr.hbm [resolvable:$true] %s142_s28 }
   0xd   : > { %p857_p9 = pneg %p1155_p8  ;;  %s1086_s30 = smov 4  }
   0xe   : > { %s1087_s4 = smov [#allocation5]   ;;  %s1088_s6 = smov 128  }
   0xf   : > { %p858_p10 = pnand %p857_p9, %p81_p1  ;;  %s144_s5 = sshll.u32 %s1087_s4, 4  ;;  %s145_s5 = int_to_ptr.vmem [resolvable:$true] %s144_s5 }
  0x10   : > { %s1089_s7 = smov 8   ;;  %s1171_s8 = sadd.s32 1, %s1082_s15  }
  0x11   : > { %860 = dma.hbm_to_vmem [thread:$0]  (!%p858_p10), %s129_s22, 128, %s131_s25, [#allocation3], %s1085_s29, %s1085_s29, %s1086_s30  }
  0x12   : > { %863 = dma.hbm_to_vmem [thread:$0]  (!%p858_p10), %s143_s28, 4096, %s145_s5, [#allocation6], %s1088_s6, %s1088_s6, %s1089_s7  }
  0x13   : > { %s64_s9 = ssub.s32 %s1082_s15, %s1171_s8  ;;  %s67_s10 = sadd.s32 1, %s1078_s14 }
  0x14   : > { %p65_p12 = scmp.eq.s32.totalorder %s64_s9, 0  ;;  %p74_p13 = scmp.ne.s32.totalorder %s1078_s14, %s1074_s13 }
  0x15   : > { %p75_p0 = scmp.eq.s32.totalorder %s1082_s15, 0  ;;  %p874_p7 = scmp.lt.s32.totalorder %s1082_s15, 2 }
  0x16   : > { %s1180_s11 = scalar_select %p65_p12, %s1078_s14, %s67_s10  }
  0x17   : > { %p1184_p3 = por %p104_p2, %p74_p13  ;;  %p76_p5 = por %p75_p0, %p74_p13 }
  0x18   : > { %s158_s20 = sand.u32 1, %s1082_s15   ;;  %s160_s21 = sand.u32 1, %s1078_s14  }
  0x19   : > { %s649_s22 = sshll.u32 %s160_s21, 4  ;;  %s807_s24 = sshll.u32 %s1082_s15, 4 }
  0x1a   : > { %s168_s27 = scalar_lea.hbm %s1273_s2, %s807_s24  ;;  %s162_s29 = scalar_lea.vmem [#allocation7], %s649_s22 }
  0x1b   : > { %s169_s28 = sshll.u32 %s168_s27, 4  ;;  %s171_s30 = sshll.u32 %s162_s29, 4  ;;  %s170_s28 = int_to_ptr.hbm [resolvable:$true] %s169_s28  ;;  %s172_s30 = int_to_ptr.vmem [resolvable:$true] %s171_s30 }
  0x1c   : > { %p1195_p9 = pnand %p874_p7, %p76_p5  ;;  %s159_s5 = scalar_lea.sflag [#allocation3], %s158_s20 }
  0x1d   : > { %s978_s9 = sshra.s32 %s170_s28, 4  ;;  %s985_s22 = scalar_lea.hbm %s1273_s2, 32  ;;  %s979_s9 = int_to_ptr.hbm [resolvable:$true] %s978_s9 }
  0x1e   : > { %s980_s10 = scalar_lea.hbm %s979_s9, 16  ;;  %p982_p10 = pneg %p1195_p9 }
  0x1f   : > { %p981_p2 = scmp.ne.s32.totalorder %s979_s9, %s980_s10  ;;  %p986_p0 = scmp.lt.s32.totalorder %s979_s9, %s1273_s2 }
  0x20   : > { %p987_p5 = scmp.lt.s32.totalorder %s985_s22, %s980_s10 }
  0x21   : > { %p983_p12 = pnand %p982_p10, %p981_p2 }
  0x22   : > { %p988_p7 = por %p987_p5, %p986_p0 }
  0x23   : > { %p984_p13 = pneg %p983_p12 }
  0x25   : > { %p989_p11 = pnand %p988_p7, %p984_p13 }
  0x27   : > { %992 = shalt.err (!%p989_p11)
}
  0x28   : > { %867 = dma.hbm_to_vmem [thread:$0]  (!%p1195_p9), %s170_s28, 256, %s172_s30, %s159_s5, %s1088_s6, %s1088_s6, %s1089_s7  }
  0x29   : > { %183 = sbr.rel (%p1155_p8) target bundleno = 377 (0x179), region = 32 }
  0x2e   : > { %1053 = dma.done.wait (%p81_p1), [#allocation3], 128  }
  0x2f   : > { %1055 = vsyncadd (%p81_p1), [#allocation3], 4294967168 }
  0x30   : > { %1057 = dma.done.wait (%p81_p1), [#allocation6], 4096  }
  0x31   : > { %1059 = vsyncadd (%p81_p1), [#allocation6], 4294963200  ;;  %s195_s20 = sand.u32 1, %s1133_s16   ;;  %s1224_s6 = sand.u32 1, %s1074_s13  }
  0x32   : > { %s656_s23 = sshll.u32 %s1224_s6, 4  ;;  %s196_s7 = scalar_lea.sflag [#allocation3], %s195_s20 }
  0x33   : > { %s1227_s27 = scalar_lea.vmem [#allocation7], %s656_s23 }
  0x34   : > { %1061 = dma.done.wait (%p1142_p4), %s196_s7, 256  }
  0x35   : > { %1063 = vsyncadd (%p1142_p4), %s196_s7, 4294967040  ;;  %v724_v0 = vld [vmem:[#allocation5 + $0x70] sm:$0xf]  ;;  %v826_v1 = vld [vmem:[#allocation5 + $0x74] sm:$0xf0]  ;;  %vm495_vm0 = vcmask 130048  }
  0x36   : > { %v788_v2 = vld [vmem:[#allocation5 + $0xf0] sm:$0xf]  ;;  %v725_v3 = vor.u32 %v826_v1, %v724_v0  ;;  %v842_v4 = vld [vmem:[#allocation5 + $0xf4] sm:$0xf0]  ;;  %v825_v5 = vld [vmem:[#allocation5 + $0x74] sm:$0xf] }
  0x37   : > { %v726_v6 = vld [vmem:[#allocation5 + $0x78] sm:$0xf0]  ;;  %v789_v7 = vor.u32 %v842_v4, %v788_v2  ;;  %v841_v9 = vld [vmem:[#allocation5 + $0xf4] sm:$0xf]  ;;  %v716_v11 = vld [vmem:[#allocation5 + $0x60] sm:$0xf] }
  0x38   : > { %v729_v8 = vor.u32 %v825_v5, %v726_v6  ;;  %v790_v10 = vld [vmem:[#allocation5 + $0xf8] sm:$0xf0]  ;;  %432 = vmatpush.bf16.msra.mxu0 %v725_v3  ;;  %v824_v13 = vld [vmem:[#allocation5 + $0x64] sm:$0xf0]  ;;  %v780_v14 = vld [vmem:[#allocation5 + $0xe0] sm:$0xf] }
  0x39   : > { %v793_v12 = vor.u32 %v841_v9, %v790_v10  ;;  %v840_v15 = vld [vmem:[#allocation5 + $0xe4] sm:$0xf0]  ;;  %446 = vmatpush.bf16.msra.mxu1 %v789_v7  ;;  %v717_v16 = vor.u32 %v824_v13, %v716_v11  ;;  %v823_v18 = vld [vmem:[#allocation5 + $0x64] sm:$0xf]  ;;  %v718_v19 = vld [vmem:[#allocation5 + $0x68] sm:$0xf0] }
  0x3a   : > { %460 = vmatpush.bf16.msra.mxu2 %v729_v8  ;;  %v781_v17 = vor.u32 %v840_v15, %v780_v14  ;;  %v839_v20 = vld [vmem:[#allocation5 + $0xe4] sm:$0xf]  ;;  %v721_v21 = vor.u32 %v823_v18, %v718_v19  ;;  %v782_v22 = vld [vmem:[#allocation5 + $0xe8] sm:$0xf0]  ;;  %v708_v23 = vld [vmem:[#allocation5 + $0x50] sm:$0xf] }
  0x3b   : > { %474 = vmatpush.bf16.msra.mxu3 %v793_v12  ;;  %v822_v24 = vld [vmem:[#allocation5 + $0x54] sm:$0xf0]  ;;  %v785_v25 = vor.u32 %v839_v20, %v782_v22  ;;  %v772_v26 = vld [vmem:[#allocation5 + $0xd0] sm:$0xf]  ;;  %v821_v28 = vld [vmem:[#allocation5 + $0x54] sm:$0xf] }
  0x3c   : > { %v838_v27 = vld [vmem:[#allocation5 + $0xd4] sm:$0xf0]  ;;  %433 = vmatpush.bf16.msra.mxu0 %v717_v16  ;;  %v709_v29 = vor.u32 %v822_v24, %v708_v23  ;;  %v710_v30 = vld [vmem:[#allocation5 + $0x58] sm:$0xf0]  ;;  %v837_v31 = vld [vmem:[#allocation5 + $0xd4] sm:$0xf] }
  0x3d   : > { %v774_v32 = vld [vmem:[#allocation5 + $0xd8] sm:$0xf0]  ;;  %447 = vmatpush.bf16.msra.mxu1 %v781_v17  ;;  %v773_v33 = vor.u32 %v838_v27, %v772_v26  ;;  %v713_v34 = vor.u32 %v821_v28, %v710_v30  ;;  %v700_v35 = vld [vmem:[#allocation5 + $0x40] sm:$0xf]  ;;  %v820_v36 = vld [vmem:[#allocation5 + $0x44] sm:$0xf0] }
  0x3e   : > { %461 = vmatpush.bf16.msra.mxu2 %v721_v21  ;;  %v764_v37 = vld [vmem:[#allocation5 + $0xc0] sm:$0xf]  ;;  %v777_v38 = vor.u32 %v837_v31, %v774_v32  ;;  %v836_v39 = vld [vmem:[#allocation5 + $0xc4] sm:$0xf0]  ;;  %v819_v40 = vld [vmem:[#allocation5 + $0x44] sm:$0xf]  ;;  %v701_v44 = vor.u32 %v820_v36, %v700_v35 }
  0x3f   : > { %475 = vmatpush.bf16.msra.mxu3 %v785_v25  ;;  %v702_v41 = vld [vmem:[#allocation5 + $0x48] sm:$0xf0]  ;;  %v835_v42 = vld [vmem:[#allocation5 + $0xc4] sm:$0xf]  ;;  %v765_v45 = vor.u32 %v836_v39, %v764_v37  ;;  %v692_v47 = vld [vmem:[#allocation5 + $0x30] sm:$0xf] }
  0x40   : > { %v766_v43 = vld [vmem:[#allocation5 + $0xc8] sm:$0xf0]  ;;  %434 = vmatpush.bf16.msra.mxu0 %v709_v29  ;;  %v705_v46 = vor.u32 %v819_v40, %v702_v41  ;;  %v818_v48 = vld [vmem:[#allocation5 + $0x34] sm:$0xf0]  ;;  %v756_v49 = vld [vmem:[#allocation5 + $0xb0] sm:$0xf] }
  0x41   : > { %448 = vmatpush.bf16.msra.mxu1 %v773_v33  ;;  %v769_v50 = vor.u32 %v835_v42, %v766_v43  ;;  %v834_v51 = vld [vmem:[#allocation5 + $0xb4] sm:$0xf0]  ;;  %v817_v52 = vld [vmem:[#allocation5 + $0x34] sm:$0xf]  ;;  %v694_v53 = vld [vmem:[#allocation5 + $0x38] sm:$0xf0]  ;;  %v693_v56 = vor.u32 %v818_v48, %v692_v47 }
  0x42   : > { %462 = vmatpush.bf16.msra.mxu2 %v713_v34  ;;  %v833_v54 = vld [vmem:[#allocation5 + $0xb4] sm:$0xf]  ;;  %v758_v55 = vld [vmem:[#allocation5 + $0xb8] sm:$0xf0]  ;;  %v757_v57 = vor.u32 %v834_v51, %v756_v49  ;;  %v697_v58 = vor.u32 %v817_v52, %v694_v53  ;;  %v684_v59 = vld [vmem:[#allocation5 + $0x20] sm:$0xf] }
  0x43   : > { %476 = vmatpush.bf16.msra.mxu3 %v777_v38  ;;  %v816_v60 = vld [vmem:[#allocation5 + $0x24] sm:$0xf0]  ;;  %v748_v61 = vld [vmem:[#allocation5 + $0xa0] sm:$0xf]  ;;  %v761_v62 = vor.u32 %v833_v54, %v758_v55  ;;  %v815_v0 = vld [vmem:[#allocation5 + $0x24] sm:$0xf] }
  0x44   : > { %435 = vmatpush.bf16.msra.mxu0 %v701_v44  ;;  %v832_v63 = vld [vmem:[#allocation5 + $0xa4] sm:$0xf0]  ;;  %v686_v1 = vld [vmem:[#allocation5 + $0x28] sm:$0xf0]  ;;  %v831_v2 = vld [vmem:[#allocation5 + $0xa4] sm:$0xf]  ;;  %v685_v4 = vor.u32 %v816_v60, %v684_v59 }
  0x45   : > { %449 = vmatpush.bf16.msra.mxu1 %v765_v45  ;;  %v750_v3 = vld [vmem:[#allocation5 + $0xa8] sm:$0xf0]  ;;  %v749_v5 = vor.u32 %v832_v63, %v748_v61  ;;  %v689_v6 = vor.u32 %v815_v0, %v686_v1  ;;  %v676_v7 = vld [vmem:[#allocation5 + $0x10] sm:$0xf]  ;;  %v814_v8 = vld [vmem:[#allocation5 + $0x14] sm:$0xf0] }
  0x46   : > { %463 = vmatpush.bf16.msra.mxu2 %v705_v46  ;;  %v740_v9 = vld [vmem:[#allocation5 + $0x90] sm:$0xf]  ;;  %v753_v10 = vor.u32 %v831_v2, %v750_v3  ;;  %v830_v11 = vld [vmem:[#allocation5 + $0x94] sm:$0xf0]  ;;  %v813_v12 = vld [vmem:[#allocation5 + $0x14] sm:$0xf]  ;;  %v677_v16 = vor.u32 %v814_v8, %v676_v7 }
  0x47   : > { %477 = vmatpush.bf16.msra.mxu3 %v769_v50  ;;  %v678_v13 = vld [vmem:[#allocation5 + $0x18] sm:$0xf0]  ;;  %v829_v14 = vld [vmem:[#allocation5 + $0x94] sm:$0xf]  ;;  %v741_v17 = vor.u32 %v830_v11, %v740_v9  ;;  %v668_v19 = vld [vmem:[#allocation5] sm:$0xf] }
  0x48   : > { %436 = vmatpush.bf16.msra.mxu0 %v693_v56  ;;  %v742_v15 = vld [vmem:[#allocation5 + $0x98] sm:$0xf0]  ;;  %v681_v18 = vor.u32 %v813_v12, %v678_v13  ;;  %v812_v20 = vld [vmem:[#allocation5 + $0x4] sm:$0xf0]  ;;  %v732_v21 = vld [vmem:[#allocation5 + $0x80] sm:$0xf] }
  0x49   : > { %450 = vmatpush.bf16.msra.mxu1 %v757_v57  ;;  %v745_v22 = vor.u32 %v829_v14, %v742_v15  ;;  %v828_v23 = vld [vmem:[#allocation5 + $0x84] sm:$0xf0]  ;;  %v811_v24 = vld [vmem:[#allocation5 + $0x4] sm:$0xf]  ;;  %v670_v25 = vld [vmem:[#allocation5 + $0x8] sm:$0xf0]  ;;  %v669_v28 = vor.u32 %v812_v20, %v668_v19 }
  0x4a   : > { %464 = vmatpush.bf16.msra.mxu2 %v697_v58  ;;  %v827_v26 = vld [vmem:[#allocation5 + $0x84] sm:$0xf]  ;;  %v734_v27 = vld [vmem:[#allocation5 + $0x88] sm:$0xf0]  ;;  %v660_v29 = vld [vmem:[%s1227_s27] sm:$0xf]  ;;  %v733_v31 = vor.u32 %v828_v23, %v732_v21  ;;  %v673_v32 = vor.u32 %v811_v24, %v670_v25 }
  0x4b   : > { %478 = vmatpush.bf16.msra.mxu3 %v761_v62  ;;  %v809_v30 = vld [vmem:[%s1227_s27 + $0x4] sm:$0xf0]  ;;  %v808_v33 = vld [vmem:[%s1227_s27 + $0x4] sm:$0xf]  ;;  %v662_v34 = vld [vmem:[%s1227_s27 + $0x8] sm:$0xf0]  ;;  %v737_v35 = vor.u32 %v827_v26, %v734_v27 }
  0x4c   : > { %437 = vmatpush.bf16.msra.mxu0 %v685_v4  ;;  %v661_v36 = vor.u32 %v809_v30, %v660_v29  ;;  %v665_v37 = vor.u32 %v808_v33, %v662_v34  ;;  %v810_v47 = vld [vmem:[#allocation2] sm:$0xff]  ;;  %s657_s18 = sshll.u32 %s1224_s6, 5  ;;  %s844_s29 = sshll.u32 %s1133_s16, 5 }
  0x4d   : > { %451 = vmatpush.bf16.msra.mxu1 %v749_v5  ;;  %s222_s28 = scalar_lea.vmem [#allocation8], %s657_s18  ;;  %s548_s5 = scalar_lea.hbm %s1274_s3, %s844_s29 }
  0x4e   : > { %465 = vmatpush.bf16.msra.mxu2 %v689_v6  ;;  %s549_s9 = sshll.u32 %s222_s28, 4  ;;  %s551_s10 = sshll.u32 %s548_s5, 4  ;;  %s550_s9 = int_to_ptr.vmem [resolvable:$true] %s549_s9  ;;  %s552_s10 = int_to_ptr.hbm [resolvable:$true] %s551_s10 }
  0x4f   : > { %479 = vmatpush.bf16.msra.mxu3 %v753_v10  ;;  %s536_s21 = scalar_lea.sflag [#allocation4], %s1224_s6  ;;  %s1022_s16 = sshra.s32 %s552_s10, 4  ;;  %s1023_s16 = int_to_ptr.hbm [resolvable:$true] %s1022_s16 }
  0x50   : > { %438 = vmatpush.bf16.msra.mxu0 %v677_v16  ;;  %s1024_s24 = scalar_lea.hbm %s1023_s16, 32  ;;  %s1028_s26 = scalar_lea.hbm %s1274_s3, 64 }
  0x51   : > { %452 = vmatpush.bf16.msra.mxu1 %v741_v17  ;;  %p1025_p1 = scmp.ne.s32.totalorder %s1023_s16, %s1024_s24  ;;  %p1029_p11 = scmp.lt.s32.totalorder %s1023_s16, %s1274_s3 }
  0x52   : > { %466 = vmatpush.bf16.msra.mxu2 %v681_v18  ;;  %p1030_p9 = scmp.lt.s32.totalorder %s1028_s26, %s1024_s24 }
  0x53   : > { %480 = vmatpush.bf16.msra.mxu3 %v745_v22  ;;  %p1026_p4 = pnand %p1025_p1, %p1184_p3 }
  0x54   : > { %439 = vmatpush.bf16.msra.mxu0 %v669_v28  ;;  %p1031_p2 = por %p1030_p9, %p1029_p11 }
  0x55   : > { %453 = vmatpush.bf16.msra.mxu1 %v733_v31  ;;  %p1027_p8 = pneg %p1026_p4 }
  0x56   : > { %467 = vmatpush.bf16.msra.mxu2 %v673_v32 }
  0x57   : > { %481 = vmatpush.bf16.msra.mxu3 %v737_v35  ;;  %440 = vmatmul.bf16.vlgmr.msra.gmra.mxu0 %v661_v36  ;;  %p1032_p10 = pnand %p1031_p2, %p1027_p8 }
  0x58   : > { %454 = vmatmul.bf16.vlgmr.msra.gmra.mxu1 %v665_v37 }
  0x59   : > { %468 = vmatmul.bf16.vlgmr.msra.gmra.mxu2 %v661_v36 }
  0x5a   : > { %482 = vmatmul.bf16.vlgmr.msra.gmra.mxu3 %v665_v37 }
  0xd4   : > { %v441_v38 = vpop.f32.mrf.mxu0 }
  0xd5   : > { %v455_v39 = vpop.f32.mrf.mxu1 }
  0xd6   : > { %v456_v44 = vadd.f32 %v455_v39, %v441_v38 }
  0xdc   : > { %v469_v40 = vpop.f32.mrf.mxu2  ;;  %v443_v42 = vpop.f32.mrf.mxu0 }
  0xdd   : > { %v483_v41 = vpop.f32.mrf.mxu3  ;;  %v457_v43 = vpop.f32.mrf.mxu1 }
  0xde   : > { %v458_v45 = vadd.f32 %v457_v43, %v443_v42  ;;  %v484_v50 = vadd.f32 %v483_v41, %v469_v40 }
  0xe0   : > { %v488_v46 = vpack.c.bf16 %v458_v45, %v456_v44 }
  0xe2   : > { %506 = vmatpush.bf16.msrb.mxu0 %v488_v46 }
  0xe4   : > { %v471_v48 = vpop.f32.mrf.mxu2 }
  0xe5   : > { %v485_v49 = vpop.f32.mrf.mxu3  ;;  %798 = vmatmul.msk.bf16.vlgmr.msrb.gmra.mxu0 %vm495_vm0, %v810_v47 }
  0xe6   : > { %v486_v51 = vadd.f32 %v485_v49, %v471_v48 }
  0xe8   : > { %v489_v52 = vpack.c.bf16 %v486_v51, %v484_v50 }
  0xea   : > { %520 = vmatpush.bf16.msrb.mxu1 %v489_v52 }
  0xed   : > { %799 = vmatmul.msk.bf16.vlgmr.msrb.gmra.mxu1 %vm495_vm0, %v810_v47 }
 0x162   : > { %v508_v53 = vpop.f32.mrf.mxu0 }
 0x163   : > { %v527_v54 = vmax.f32 %v508_v53, 0.0 }
 0x165   : > { %531 = vst [vmem:[%s222_s28] sm:$0xff] %v527_v54 }
 0x16a   : > { %v522_v55 = vpop.f32.mrf.mxu1  ;;  %v510_v57 = vpop.f32.mrf.mxu0 }
 0x16b   : > { %v528_v56 = vmax.f32 %v522_v55, 0.0  ;;  %v529_v58 = vmax.f32 %v510_v57, 0.0 }
 0x16d   : > { %532 = vst [vmem:[%s222_s28 + $0x8] sm:$0xff] %v528_v56 }
 0x16e   : > { %533 = vst [vmem:[%s222_s28 + $0x10] sm:$0xff] %v529_v58 }
 0x172   : > { %v524_v59 = vpop.f32.mrf.mxu1 }
 0x173   : > { %v530_v60 = vmax.f32 %v524_v59, 0.0 }
 0x175   : > { %534 = vst [vmem:[%s222_s28 + $0x18] sm:$0xff] %v530_v60 }
 0x176   : > { %1035 = shalt.err (!%p1032_p10)
}
 0x177   : > { %s1090_s6 = smov 256   ;;  %s1091_s7 = smov 16  }
 0x178   : > { %855 = dma.vmem_to_hbm [thread:$0]  (%p1184_p3), %s550_s9, 512, %s552_s10, %s536_s21, %s1090_s6, %s1090_s6, %s1091_s7  }
 0x179 PF: > { %s566_s27 = sand.u32 1, %s1070_s12   ;;  %p1280_p12 = scmp.ge.s32.totalorder %s1082_s15, 2 }
 0x17a   : > { %s567_s18 = scalar_lea.sflag [#allocation4], %s566_s27 }
 0x17b   : > { %p869_p13 = pnand %p1280_p12, %p1147_p6 }
 0x17d   : > { %p870_p0 = pneg %p869_p13 }
 0x17f   : > { %1065 = dma.done.wait (%p870_p0), %s567_s18, 512  }
 0x180   : > { %1067 = vsyncadd (%p870_p0), %s567_s18, 4294966784  ;;  %p15_p5 = scmp.ge.s32.totalorder %s1171_s8, 4   ;;  %s1281_s12 = smov %s1074_s13 }
 0x181   : > { %s1282_s13 = smov %s1078_s14  ;;  %s1283_s14 = smov %s1180_s11 }
 0x182   : > { %s1284_s15 = smov %s1171_s8  ;;  %17 = sbr.rel (!%p15_p5) target bundleno = 5 (0x5), region = 84 }
 0x187   :  { %573 = vsyncpa [#allocation3], 1 }
 0x188   :  { %575 = vsyncpa [#allocation3 + $0x1], 1 }
 0x189   :  { %576 = vsyncpa [#allocation6], 1 }
 0x18a   :  { %577 = vsyncpa [#allocation4], 1 }
 0x18b   :  { %579 = vsyncpa [#allocation4 + $0x1], 1 }

</bundles_post_ra>
